<compile_context>
chip_gen: v7x
topology: tpu7x:2x2x1
jax: 0.10.0
libtpu: 0.0.40
codegen_flags: <defaults>
</compile_context>

<pallas_src>
import functools
from types import SimpleNamespace

import numpy as np
import jax
import jax.numpy as jnp
from jax.experimental import pallas as pl
from jax.experimental.pallas import tpu as pltpu


# ---------------------------------------------------------------------------
# Bicubic (align_corners=True) interpolation matrices
# (matches torch.nn.Upsample(mode='bicubic', align_corners=True), A = -0.75)
# ---------------------------------------------------------------------------
def _cubic_coeffs(t, A=-0.75):
    def cc1(x):  # |x| <= 1
        return ((A + 2.0) * x - (A + 3.0)) * x * x + 1.0

    def cc2(x):  # 1 < |x| < 2
        return ((A * x - 5.0 * A) * x + 8.0 * A) * x - 4.0 * A

    return [cc2(t + 1.0), cc1(t), cc1(1.0 - t), cc2(2.0 - t)]


def bicubic_matrix(out_size, in_size):
    M = np.zeros((out_size, in_size), np.float32)
    scale = 0.0 if out_size <= 1 else (in_size - 1) / (out_size - 1)
    for i in range(out_size):
        src = i * scale
        i0 = int(np.floor(src))
        t = src - i0
        w = _cubic_coeffs(t)
        for k in range(4):
            idx = min(max(i0 - 1 + k, 0), in_size - 1)
            M[i, idx] += w[k]
    return M


# ---------------------------------------------------------------------------
# Pallas kernel 1: separable bicubic resize (batched MXU matmuls, no per-b loop)
# ---------------------------------------------------------------------------
def _bicubic_resize_kernel(x_ref, wh_ref, wwt_ref, o_ref, *, bc, hin, win, hout, wout):
    # x_ref: (bc, hin, win) f32; wh_ref: (hout, hin); wwt_ref: (win, wout)
    # o_ref: (bc, hout, wout);  out[b] = Wh @ x[b] @ Ww^T  (separable bicubic)
    f32 = jnp.float32
    # W contraction: one big (bc*hin, win) @ (win, wout) matmul.
    t = jnp.dot(x_ref[...].reshape(bc * hin, win), wwt_ref[...],
                preferred_element_type=f32)
    t = t.reshape(bc, hin, wout)
    # H contraction: single batched matmul with bc as the batch dimension.
    whb = jnp.broadcast_to(wh_ref[...][None, :, :], (bc, hout, hin))
    o_ref[...] = jax.lax.dot_general(
        whb, t, dimension_numbers=(((2,), (1,)), ((0,), (0,))),
        preferred_element_type=f32)


# ---------------------------------------------------------------------------
# Pallas kernel 2: fused conv0..conv7 stack, VMEM-resident ping-pong activation
# ---------------------------------------------------------------------------
def _fused_conv_stack_kernel(x_ref, w_ref, b_ref, o_ref, pad_a, pad_b,
                             *, hout, wout, cpad, cout_final):
    # x_ref : (hout, wout, cpad) f32      resized activation, HWC, channel-padded
    # w_ref : (n_layers, 3, 3*cpad, cpad) bf16   per-dh im2col weight slabs
    # b_ref : (n_layers, 1, cpad) f32     biases (accumulator init)
    # o_ref : (hout*wout, cout_final) f32
    # pad_a, pad_b : (hout+2, wout+2, cpad) bf16 VMEM ping-pong slabs (halo = 0)
    f32 = jnp.float32
    n_layers = w_ref.shape[0]
    hw = hout * wout

    # In-kernel 'same' zero padding: zero both slabs once; only interiors are
    # written afterwards, so the 1-pixel halo stays zero for every layer.
    pad_a[...] = jnp.zeros_like(pad_a)
    pad_b[...] = jnp.zeros_like(pad_b)
    pad_a[1:1 + hout, 1:1 + wout, :] = x_ref[...].astype(pad_a.dtype)

    for layer in range(n_layers):
        src = pad_a if layer % 2 == 0 else pad_b
        dst = pad_b if layer % 2 == 0 else pad_a

        # Bias folded into the accumulator init (hoisted out of the tap loop).
        acc = jnp.broadcast_to(b_ref[layer], (hw, cpad)).astype(f32)

        # Hoist the dw shifts: build the 3 W-shifted views once per layer and
        # reuse them for every dh tap (im2col slab, K = 3*cpad contraction).
        col_full = jnp.concatenate(
            [src[:, dw:dw + wout, :] for dw in range(3)],
            axis=-1)                                            # (hout+2, wout, 3*cpad) bf16

        for dh in range(3):
            col = col_full[dh:dh + hout].reshape(hw, 3 * cpad)  # bf16 im2col rows
            acc = acc + jnp.dot(col, w_ref[layer, dh],          # bf16 x bf16 -> f32 acc
                                preferred_element_type=f32)

        if layer < n_layers - 1:
            y = jnp.maximum(acc, 0.0)                           # fused ReLU
            dst[1:1 + hout, 1:1 + wout, :] = (
                y.reshape(hout, wout, cpad).astype(dst.dtype))
        else:
            o_ref[...] = acc[:, :cout_final]                    # conv7: no ReLU


# ---------------------------------------------------------------------------
# Parameters: init + trace-time packing (zero-pad channels, bf16, im2col layout)
# ---------------------------------------------------------------------------
def init_params(key, input_channels=3, channels=64, kernel_size=3):
    dims = ([(input_channels, channels)]
            + [(channels, channels)] * 6
            + [(channels, input_channels)])
    params = []
    for cin, cout in dims:
        key, kw = jax.random.split(key)
        fan_in = kernel_size * kernel_size * cin
        wl = jax.random.normal(kw, (kernel_size, kernel_size, cin, cout),
                               jnp.float32) * np.sqrt(2.0 / fan_in)
        bl = jnp.zeros((cout,), jnp.float32)
        params.append((wl, bl))
    return params


def _pack_params(params, cpad):
    # Zero-pad every layer's (3,3,cin,cout) HWIO weight to (3,3,cpad,cpad) so all
    # layers share a uniform bf16 weight stack, reshaped once at trace time to the
    # per-dh im2col layout (n, 3, 3*cpad, cpad); biases stay f32.
    n = len(params)
    ws = np.zeros((n, 3, 3, cpad, cpad), np.float32)
    bs = np.zeros((n, 1, cpad), np.float32)
    for i, (w, b) in enumerate(params):
        _, _, cin, cout = w.shape
        ws[i, :, :, :cin, :cout] = np.asarray(w)
        bs[i, 0, :cout] = np.asarray(b)
    w_stack = jnp.asarray(ws.reshape(n, 3, 3 * cpad, cpad), dtype=jnp.bfloat16)
    b_stack = jnp.asarray(bs)
    return w_stack, b_stack


# ---------------------------------------------------------------------------
# ZSSRUpsampler forward
# ---------------------------------------------------------------------------
def zssr_upsampler_forward(x, params, scale_factor, input_channels, channels):
    b, c, h, w = x.shape
    bc = b * c
    assert bc == input_channels, "torch model requires b*c == conv0 input_channels"
    hout = int(np.floor(h / scale_factor))
    wout = int(np.floor(w / scale_factor))
    cpad = max(channels, input_channels)

    xr = x.reshape(bc, h, w).astype(jnp.float32)
    wh = jnp.asarray(bicubic_matrix(hout, h))
    wwt = jnp.asarray(bicubic_matrix(wout, w).T)

    # Pallas kernel 1: bicubic downscale.
    resized = pl.pallas_call(
        functools.partial(_bicubic_resize_kernel,
                          bc=bc, hin=h, win=w, hout=hout, wout=wout),
        out_shape=jax.ShapeDtypeStruct((bc, hout, wout), jnp.float32),
        in_specs=[pl.BlockSpec(memory_space=pltpu.MemorySpace.VMEM)] * 3,
        out_specs=pl.BlockSpec(memory_space=pltpu.MemorySpace.VMEM),
    )(xr, wh, wwt)

    # Plain-JAX layout glue: CHW -> HWC and channel zero-pad to cpad lanes.
    x_hwc = jnp.transpose(resized, (1, 2, 0))
    x_hwc = jnp.pad(x_hwc, ((0, 0), (0, 0), (0, cpad - bc)))

    w_stack, b_stack = _pack_params(params, cpad)

    # Pallas kernel 2: the whole conv stack, fused, activations VMEM-resident.
    out = pl.pallas_call(
        functools.partial(_fused_conv_stack_kernel,
                          hout=hout, wout=wout, cpad=cpad,
                          cout_final=input_channels),
        out_shape=jax.ShapeDtypeStruct((hout * wout, input_channels), jnp.float32),
        in_specs=[pl.BlockSpec(memory_space=pltpu.MemorySpace.VMEM)] * 3,
        out_specs=pl.BlockSpec(memory_space=pltpu.MemorySpace.VMEM),
        scratch_shapes=[pltpu.VMEM((hout + 2, wout + 2, cpad), jnp.bfloat16),
                        pltpu.VMEM((hout + 2, wout + 2, cpad), jnp.bfloat16)],
    )(x_hwc, w_stack, b_stack)

    out = out.reshape(hout, wout, bc)
    out = jnp.transpose(out, (2, 0, 1)).reshape(b, c, hout, wout)
    return out


# ---------------------------------------------------------------------------
# Pure-JAX reference (conv_dtype=bf16 mirrors the kernel's mixed precision)
# ---------------------------------------------------------------------------
def reference_forward(x, params, scale_factor, conv_dtype=jnp.float32):
    b, c, h, w = x.shape
    xr = x.reshape(b * c, h, w)
    hout = int(np.floor(h / scale_factor))
    wout = int(np.floor(w / scale_factor))
    wh = jnp.asarray(bicubic_matrix(hout, h))
    ww = jnp.asarray(bicubic_matrix(wout, w))
    a = jnp.einsum('oh,bhw,pw->bop', wh, xr, ww,
                   precision=jax.lax.Precision.HIGHEST)[None]   # (1, b*c, H, W) f32
    n = len(params)
    for i, (wl, bl) in enumerate(params):
        y = jax.lax.conv_general_dilated(
            a.astype(conv_dtype), wl.astype(conv_dtype),
            window_strides=(1, 1), padding='SAME',
            dimension_numbers=('NCHW', 'HWIO', 'NCHW'),
            preferred_element_type=jnp.float32)
        y = y + bl[None, :, None, None]
        a = jnp.maximum(y, 0.0) if i < n - 1 else y
    return a.reshape(b, c, hout, wout)


if __name__ == "__main__":
    conf = SimpleNamespace(scale_factor=2)
    input_channels = 4         # must equal b * c (torch forward reshapes (b,c) -> channels)
    channels = 32
    b, c, h, w = 2, 2, 16, 16

    key = jax.random.PRNGKey(0)
    key, kx = jax.random.split(key)
    x = jax.random.normal(kx, (b, c, h, w), jnp.float32)
    params = init_params(key, input_channels=input_channels, channels=channels)

    out = zssr_upsampler_forward(x, params, conf.scale_factor,
                                 input_channels=input_channels, channels=channels)
    out = jax.block_until_ready(out)
    assert out.shape == (b, c, h // conf.scale_factor, w // conf.scale_factor)

    # Tight check vs a reference matching the kernel's bf16-input / f32-accum policy.
    ref_mp = reference_forward(x, params, conf.scale_factor, conv_dtype=jnp.bfloat16)
    np.testing.assert_allclose(np.asarray(out), np.asarray(ref_mp),
                               rtol=1e-2, atol=1e-2)
    # Loose sanity check vs the full-f32 reference (bounds the bf16 rounding error).
    ref_f32 = reference_forward(x, params, conf.scale_factor, conv_dtype=jnp.float32)
    np.testing.assert_allclose(np.asarray(out), np.asarray(ref_f32),
                               rtol=1e-1, atol=1e-1)

    print("KERNEL_OK")
</pallas_src>

<mosaic_0001>
module attributes {stable_mosaic.version = 11 : i64} {
  func.func @_bicubic_resize_kernel(%arg0: memref<4x16x16xf32, #tpu.memory_space<vmem>>, %arg1: memref<8x16xf32, #tpu.memory_space<vmem>>, %arg2: memref<16x8xf32, #tpu.memory_space<vmem>>, %arg3: memref<4x8x8xf32, #tpu.memory_space<vmem>>) attributes {dimension_semantics = [], scalar_prefetch = 0 : i64, scratch_operands = 0 : i64, tpu.core_type = #tpu.core_type<tc>} {
    %c0 = arith.constant 0 : index
    %c0_0 = arith.constant 0 : index
    %c0_1 = arith.constant 0 : index
    %0 = vector.load %arg0[%c0, %c0_0, %c0_1] : memref<4x16x16xf32, #tpu.memory_space<vmem>>, vector<4x16x16xf32>
    %1 = vector.shape_cast %0 : vector<4x16x16xf32> to vector<64x16xf32>
    %c0_2 = arith.constant 0 : index
    %c0_3 = arith.constant 0 : index
    %2 = vector.load %arg2[%c0_2, %c0_3] : memref<16x8xf32, #tpu.memory_space<vmem>>, vector<16x8xf32>
    %cst = arith.constant dense<0.000000e+00> : vector<64x8xf32>
    %3 = tpu.matmul %1, %2, %cst {dimension_numbers = #tpu.dot_dimension_numbers<[1], [0], [0], [1], [0, 0, 1, 1], [], []>} : vector<64x16xf32>, vector<16x8xf32>, vector<64x8xf32> -> vector<64x8xf32>
    %4 = vector.shape_cast %3 : vector<64x8xf32> to vector<4x16x8xf32>
    %c0_4 = arith.constant 0 : index
    %c0_5 = arith.constant 0 : index
    %5 = vector.load %arg1[%c0_4, %c0_5] : memref<8x16xf32, #tpu.memory_space<vmem>>, vector<8x16xf32>
    %6 = vector.shape_cast %5 : vector<8x16xf32> to vector<1x8x16xf32>
    %7 = vector.shape_cast %6 : vector<1x8x16xf32> to vector<1x8x16xf32>
    %8 = vector.broadcast %7 : vector<1x8x16xf32> to vector<4x8x16xf32>
    %cst_6 = arith.constant dense<0.000000e+00> : vector<4x8x8xf32>
    %9 = tpu.matmul %8, %4, %cst_6 {dimension_numbers = #tpu.dot_dimension_numbers<[2], [1], [1], [2], [0, 0, 0, 1, 1, 2], [0], [0]>} : vector<4x8x16xf32>, vector<4x16x8xf32>, vector<4x8x8xf32> -> vector<4x8x8xf32>
    %c0_7 = arith.constant 0 : index
    %c0_8 = arith.constant 0 : index
    %c0_9 = arith.constant 0 : index
    %10 = vector.load %arg3[%c0_7, %c0_8, %c0_9] : memref<4x8x8xf32, #tpu.memory_space<vmem>>, vector<4x8x8xf32>
    tpu.vector_store %arg3[%c0_7, %c0_8, %c0_9], %9 {strides = array<i32>} : memref<4x8x8xf32, #tpu.memory_space<vmem>>, vector<4x8x8xf32>,
    return
  }
}

</mosaic_0001>

<bundles_post_ra>
// kernel: tpu_custom_call.1
= control target key start
LH: loop header
LB: loop body
LE: loop exit
PB: predicated region body
PF: predicated region fallthrough
CT: control target
= control target key end

     0   :  { %8 = vsyncpa [#allocation3], 0  ;;  %s706_s0 = inlined_call_operand.hbm [shape: f32[4,16,16], index: 0, kind: input, shape index: {}]   ;;  %s707_s1 = inlined_call_operand.vmem [shape: f32[8,16], index: 1, kind: input, shape index: {}]   ;;  %s708_s2 = inlined_call_operand.vmem [shape: f32[16,8], index: 2, kind: input, shape index: {}]   ;;  %s709_s3 = inlined_call_operand.hbm [shape: f32[4,8,8], index: 3, kind: output, shape index: {}]  }
   0x1   :  { %9 = vsyncpa [#allocation4], 0  ;;  %s624_s12 = smov [#allocation2]   ;;  %s576_s16 = scalar_lea.hbm %s706_s0, 1024 }
   0x2   :  { %s15_s13 = sshll.u32 %s624_s12, 4  ;;  %p577_p0 = scmp.ne.s32.totalorder %s706_s0, %s576_s16  ;;  %s16_s13 = int_to_ptr.vmem [resolvable:$true] %s15_s13 }
   0x3   :  { %p580_p1 = scmp.lt.u32.totalorder %s576_s16, %s706_s0 }
   0x5   :  { %p582_p2 = pnand %p580_p1, %p577_p0 }
   0x7   :  { %585 = shalt.err (!%p582_p2)
}
   0x8   :  { %s586_s21 = scalar_lea.vmem %s16_s13, 1024  ;;  %p591_p4 = scmp.lt.s32.totalorder %s16_s13, %s16_s13 }
   0x9   :  { %p587_p3 = scmp.ne.s32.totalorder %s16_s13, %s586_s21  ;;  %p592_p5 = scmp.lt.s32.totalorder %s586_s21, %s586_s21 }
   0xb   :  { %p593_p6 = por %p592_p5, %p591_p4 }
   0xd   :  { %p594_p7 = pnand %p593_p6, %p587_p3 }
   0xf   :  { %597 = shalt.err (!%p594_p7)
}
  0x10   :  { %s625_s22 = smov 128   ;;  %s626_s23 = smov 8  }
  0x11   :  { %21 = dma.hbm_to_vmem [thread:$0]  %s706_s0, 1024, %s16_s13, [#allocation3], %s625_s22, %s625_s22, %s626_s23  }
  0x12   :  { %620 = dma.done.wait [#allocation3], 1024  }
  0x13   :  { %621 = vsyncadd [#allocation3], 4294966272  ;;  %vm39_vm0 = vcmask 130048   ;;  %v37_v0 = vld [vmem:[%s708_s2] sm:$0xff]  ;;  %v38_v1 = vld [vmem:[%s708_s2 + $0x8] sm:$0xff]  ;;  %v627_v11 = vmov 0.0|0.0  }
  0x14   :  { %v29_v2 = vld [vmem:[#allocation2] sm:$0xff]  ;;  %v553_v3 = vpack.c.bf16 %v38_v1, %v37_v0  ;;  %v30_v4 = vld [vmem:[#allocation2 + $0x8] sm:$0xff]  ;;  %v31_v5 = vld [vmem:[#allocation2 + $0x10] sm:$0xff]  ;;  %557 = vmatprep.subr.bf16.mxu1 %v627_v11  ;;  %vm628_vm1 = vmmov 0   ;;  %v629_v12 = vmov 0.0   ;;  %vm453_vm2 = vcmask 64512  }
  0x15   :  { %513 = vmatprep.mubr.msk.f32.mxu0 %vm39_vm0, %v29_v2  ;;  %v32_v6 = vld [vmem:[#allocation2 + $0x18] sm:$0xff]  ;;  %v33_v7 = vld [vmem:[#allocation2 + $0x20] sm:$0xff]  ;;  %v34_v8 = vld [vmem:[#allocation2 + $0x28] sm:$0xff]  ;;  %529 = vmatprep.mubr.msk.f32.mxu1 %vm628_vm1, %v629_v12 }
  0x16   :  { %554 = vmatprep.subr.bf16.mxu0 %v553_v3  ;;  %v35_v9 = vld [vmem:[#allocation2 + $0x30] sm:$0xff]  ;;  %v36_v10 = vld [vmem:[#allocation2 + $0x38] sm:$0xff]  ;;  %v169_v17 = vld [vmem:[%s707_s1] sm:$0xff]  ;;  %s630_s1 = smov [#allocation5]  }
  0x17   :  { %556 = vmatpush3.bf16.msra.mxu0 %v553_v3  ;;  %s463_s30 = sshll.u32 %s630_s1, 4  ;;  %s464_s30 = int_to_ptr.vmem [resolvable:$true] %s463_s30 }
  0x18   :  { %s598_s4 = scalar_lea.vmem %s464_s30, 512  ;;  %p603_p9 = scmp.lt.s32.totalorder %s464_s30, %s464_s30 }
  0x19   :  { %p599_p8 = scmp.ne.s32.totalorder %s464_s30, %s598_s4  ;;  %p604_p10 = scmp.lt.s32.totalorder %s598_s4, %s598_s4 }
  0x1a   :  { %514 = vmatmul.mubr.msk.f32.vlgmr.msra.gmra.mrb[0].mxu0 %vm39_vm0, %v30_v4 }
  0x1b   :  { %516 = vmatprep.mubr.msk.f32.mxu0 %vm39_vm0, %v31_v5  ;;  %p605_p11 = por %p604_p10, %p603_p9 }
  0x1d   :  { %p606_p12 = pnand %p605_p11, %p599_p8 }
  0x1e   :  { %517 = vmatmul.mubr.msk.f32.gmra.mrb[2].mxu0 %vm39_vm0, %v32_v6 }
  0x1f   :  { %519 = vmatprep.mubr.msk.f32.mxu0 %vm39_vm0, %v33_v7 }
  0x22   :  { %520 = vmatmul.mubr.msk.f32.gmra.mrb[4].mxu0 %vm39_vm0, %v34_v8 }
  0x23   :  { %522 = vmatprep.mubr.msk.f32.mxu0 %vm39_vm0, %v35_v9 }
  0x26   :  { %523 = vmatmul.mubr.msk.f32.gmra.mrb[6].mxu0 %vm39_vm0, %v36_v10 }
  0xed   :  { %v515_v13 = vpop.f32.mrb[0].mxu0 }
  0xee   :  { %v130_v14 = vpop.f32.mrb[1].mxu0 }
  0xef   :  { %v558_v15 = vpack.c.bf16 %v515_v13, %v130_v14 }
  0xf1   :  { %v518_v16 = vpop.f32.mrb[2].mxu0  ;;  %559 = vmatpush3.bf16.msra.mxu1 %v558_v15 }
  0xf2   :  { %v140_v18 = vpop.f32.mrb[3].mxu0  ;;  %560 = vmatprep.subr.bf16.mxu1 %v627_v11 }
  0xf3   :  { %v561_v19 = vpack.c.bf16 %v518_v16, %v140_v18 }
  0xf4   :  { %530 = vmatmul.mubr.msk.f32.vlgmr.msra.gmra.mrb[0].mxu1 %vm39_vm0, %v169_v17 }
  0xf5   :  { %v521_v20 = vpop.f32.mrb[4].mxu0  ;;  %562 = vmatpush3.bf16.msra.mxu1 %v561_v19  ;;  %536 = vmatprep.mubr.msk.f32.mxu1 %vm628_vm1, %v629_v12 }
  0xf6   :  { %v150_v21 = vpop.f32.mrb[5].mxu0  ;;  %563 = vmatprep.subr.bf16.mxu1 %v627_v11 }
  0xf7   :  { %v564_v22 = vpack.c.bf16 %v521_v20, %v150_v21 }
  0xf8   :  { %537 = vmatmul.mubr.msk.f32.vlgmr.msra.gmra.mrb[2].mxu1 %vm39_vm0, %v169_v17 }
  0xf9   :  { %v524_v23 = vpop.f32.mrb[6].mxu0  ;;  %565 = vmatpush3.bf16.msra.mxu1 %v564_v22  ;;  %543 = vmatprep.mubr.msk.f32.mxu1 %vm628_vm1, %v629_v12 }
  0xfa   :  { %v160_v24 = vpop.f32.mrb[7].mxu0  ;;  %566 = vmatprep.subr.bf16.mxu1 %v627_v11 }
  0xfb   :  { %v567_v25 = vpack.c.bf16 %v524_v23, %v160_v24 }
  0xfc   :  { %544 = vmatmul.mubr.msk.f32.vlgmr.msra.gmra.mrb[4].mxu1 %vm39_vm0, %v169_v17 }
  0xfd   :  { %568 = vmatpush3.bf16.msra.mxu1 %v567_v25  ;;  %550 = vmatprep.mubr.msk.f32.mxu1 %vm628_vm1, %v629_v12 }
 0x100   :  { %551 = vmatmul.mubr.msk.f32.vlgmr.msra.gmra.mrb[6].mxu1 %vm39_vm0, %v169_v17 }
 0x1c7   :  { %v239_v26 = vpop.f32.mrb[0].mxu1 }
 0x1c8   :  { %454 = vst.msk [vmem:[#allocation5] sm:$0xff] %vm453_vm2, %v239_v26  ;;  %v531_v27 = vpop.f32.mrb[1].mxu1 }
 0x1cb   :  { %v309_v28 = vpop.f32.mrb[2].mxu1 }
 0x1cc   :  { %455 = vst.msk [vmem:[#allocation5 + $0x8] sm:$0xff] %vm453_vm2, %v309_v28  ;;  %v538_v29 = vpop.f32.mrb[3].mxu1 }
 0x1cf   :  { %v379_v30 = vpop.f32.mrb[4].mxu1 }
 0x1d0   :  { %456 = vst.msk [vmem:[#allocation5 + $0x10] sm:$0xff] %vm453_vm2, %v379_v30  ;;  %v545_v31 = vpop.f32.mrb[5].mxu1 }
 0x1d3   :  { %v449_v32 = vpop.f32.mrb[6].mxu1 }
 0x1d4   :  { %457 = vst.msk [vmem:[#allocation5 + $0x18] sm:$0xff] %vm453_vm2, %v449_v32  ;;  %v552_v33 = vpop.f32.mrb[7].mxu1 }
 0x1d5   :  { %609 = shalt.err (!%p606_p12)
}
 0x1d6   :  { %s610_s7 = scalar_lea.hbm %s709_s3, 512 }
 0x1d7   :  { %p611_p13 = scmp.ne.s32.totalorder %s709_s3, %s610_s7  ;;  %p614_p0 = scmp.lt.u32.totalorder %s610_s7, %s709_s3 }
 0x1d9   :  { %p616_p1 = pnand %p614_p0, %p611_p13 }
 0x1db   :  { %619 = shalt.err (!%p616_p1)
}
 0x1dc   :  { %469 = dma.vmem_to_hbm [thread:$0]  %s464_s30, 512, %s709_s3, [#allocation4], %s625_s22, %s625_s22, %s626_s23  }
 0x1dd   :  { %622 = dma.done.wait [#allocation4], 512  }
 0x1de   :  { %623 = vsyncadd [#allocation4], 4294966784 }
 0x1df   :  { %473 = vsyncpa [#allocation3], 1 }
 0x1e0   :  { %474 = vsyncpa [#allocation4], 1 }

</bundles_post_ra>
